<compile_context>
chip_gen: v5e
topology: v5e:2x2
jax: 0.10.0
libtpu: 0.0.40
codegen_flags: <defaults>
</compile_context>

<pallas_src>
import numpy as np
import jax
import jax.numpy as jnp
from jax.experimental import pallas as pl
from jax.experimental.pallas import tpu as pltpu


def _round_up(a, b):
    return (a + b - 1) // b * b


def _cdiv(a, b):
    return (a + b - 1) // b


def _pick_tile_p(P, Q, K, c_pad, n_batch, *, in_bytes, out_bytes,
                 block_budget=24 * 1024 * 1024, target_steps=8):
    """Pick the pooled-position tile size (multiple of 8, >= 8) so that the
    double-buffered input/output blocks stay well inside VMEM on all TPU
    generations (v7x has only 64 MiB physical) and the grid has enough steps
    to overlap DMA with compute / feed both v7x TensorCores."""
    tile = min(512, _round_up(P, 8))
    # double-buffered input block (Q*tile, K) + output block (tile, c_pad)
    while tile > 8 and (2 * Q * tile * K * in_bytes
                        + 2 * tile * c_pad * out_bytes) > block_budget:
        tile -= 8
    # prefer >= target_steps grid steps so the pipeline can actually overlap
    while tile > 32 and n_batch * _cdiv(P, tile) < target_steps:
        tile = max(32, _round_up(tile // 2, 8))
    return max(8, tile)


def conv_block_forward(x, w, *, kernel_size=(6, 6), stride=(1, 1),
                       padding=(5, 5), pool_size=(2, 2),
                       compute_dtype=jnp.bfloat16, tile_p=None):
    """Conv2d(k=6, stride=1, pad=5, bias=False) -> max_pool2d(2x2), NCHW in/out."""
    N, C_in, H, W = x.shape
    C_out, C_in_w, KH, KW = w.shape
    assert C_in == C_in_w and (KH, KW) == tuple(kernel_size)
    sh, sw = stride
    ph, pw = padding
    qh, qw = pool_size

    conv_h = (H + 2 * ph - KH) // sh + 1
    conv_w = (W + 2 * pw - KW) // sw + 1
    out_h = conv_h // qh          # F.max_pool2d default: stride=kernel, floor
    out_w = conv_w // qw
    Q = qh * qw                   # pool-window offsets
    P = out_h * out_w             # pooled spatial positions
    K = C_in * KH * KW            # receptive field (C_in-major, then kh, kw)
    C_pad = _round_up(max(C_out, 128), 128)   # lane-dense output / MXU N dim

    in_bytes = np.dtype(compute_dtype).itemsize
    out_bytes = np.dtype(x.dtype).itemsize
    if tile_p is None:
        tile_p = _pick_tile_p(P, Q, K, C_pad, N,
                              in_bytes=in_bytes, out_bytes=out_bytes)
    tile_p = _round_up(tile_p, 8)
    P_pad = _round_up(P, tile_p)
    num_pt = P_pad // tile_p
    QT = Q * tile_p               # matmul M dim per grid step

    # ---- glue: shifted-slice im2col (no 8-D advanced-index gather) ----
    xp = jnp.pad(x, ((0, 0), (0, 0), (ph, ph), (pw, pw)))
    Hc, Wc = qh * out_h, qw * out_w            # conv rows/cols kept by floor pool
    slabs = [xp[:, :, kh:kh + (Hc - 1) * sh + 1:sh, kw:kw + (Wc - 1) * sw + 1:sw]
             for kh in range(KH) for kw in range(KW)]      # each (N, C_in, Hc, Wc)
    pat = jnp.stack(slabs, axis=2)                         # (N, C_in, KH*KW, Hc, Wc)
    pat = pat.reshape(N, K, Hc, Wc)                        # K in (C_in, kh, kw) order
    pat = pat.reshape(N, K, out_h, qh, out_w, qw)
    pat = jnp.transpose(pat, (0, 3, 5, 2, 4, 1))           # (N, qh, qw, out_h, out_w, K)
    pat = pat.reshape(N, Q, P, K)
    if P_pad > P:
        pat = jnp.pad(pat, ((0, 0), (0, 0), (0, P_pad - P), (0, 0)))
    pat = pat.astype(compute_dtype)
    # pre-tile so each grid step reads one contiguous, sublane-aligned (QT, K) slab
    pat = pat.reshape(N, Q, num_pt, tile_p, K)
    pat = jnp.transpose(pat, (0, 2, 1, 3, 4)).reshape(N, num_pt, QT, K)

    # weight as (K, C_pad): (C_in, kh, kw)-major rows, zero-padded output columns
    wmat = jnp.transpose(w.reshape(C_out, K))
    wmat = jnp.pad(wmat, ((0, 0), (0, C_pad - C_out))).astype(compute_dtype)

    # ---- Pallas kernel: one batched MXU matmul + VPU max over pool offsets ----
    def kernel(p_ref, w_ref, o_ref):
        # (Q*tile_p, K) @ (K, C_pad) in bf16, f32 accumulate
        c = jnp.dot(p_ref[0, 0], w_ref[...], preferred_element_type=jnp.float32)
        m = c[0:tile_p]
        for q in range(1, Q):                       # static, sublane-aligned slices
            m = jnp.maximum(m, c[q * tile_p:(q + 1) * tile_p])
        o_ref[0] = m.astype(o_ref.dtype)            # (tile_p, C_pad) unmasked store

    out_flat = pl.pallas_call(
        kernel,
        out_shape=jax.ShapeDtypeStruct((N, P_pad, C_pad), x.dtype),
        grid_spec=pltpu.PrefetchScalarGridSpec(
            num_scalar_prefetch=0,
            grid=(N, num_pt),
            in_specs=[
                pl.BlockSpec((1, 1, QT, K), lambda n, t: (n, t, 0, 0)),
                pl.BlockSpec((K, C_pad), lambda n, t: (0, 0)),
            ],
            out_specs=pl.BlockSpec((1, tile_p, C_pad), lambda n, t: (n, t, 0)),
        ),
        compiler_params=pltpu.CompilerParams(
            dimension_semantics=("parallel", "parallel"),
            vmem_limit_bytes=48 * 1024 * 1024),
    )(pat, wmat)

    # ---- glue: slice off padding, back to NCHW ----
    out = out_flat[:, :P, :C_out].reshape(N, out_h, out_w, C_out)
    return jnp.transpose(out, (0, 3, 1, 2))


if __name__ == "__main__":
    key = jax.random.PRNGKey(0)
    kx, kw = jax.random.split(key)

    N, C_in, C_out, H, W = 2, 4, 8, 16, 16
    KH, KW = 6, 6

    x = jax.random.normal(kx, (N, C_in, H, W), dtype=jnp.float32)
    # deterministic conv weight (shape matches Conv(in=4, out=8, k=6, bias=False))
    bound = 1.0 / np.sqrt(C_in * KH * KW)
    w = jax.random.uniform(kw, (C_out, C_in, KH, KW), jnp.float32, -bound, bound)

    fwd = jax.jit(conv_block_forward)
    out = jax.block_until_ready(fwd(x, w))
    assert out.shape == (N, C_out, 10, 10), out.shape

    # independent reference: XLA conv (NCHW/OIHW, HIGHEST) + 2x2 floor max-pool.
    # Tolerance accommodates the bf16 MXU inputs vs the f32 HIGHEST reference.
    ref_conv = jax.lax.conv_general_dilated(
        x, w, window_strides=(1, 1), padding=((5, 5), (5, 5)),
        dimension_numbers=("NCHW", "OIHW", "NCHW"),
        precision=jax.lax.Precision.HIGHEST)
    rc = ref_conv[:, :, :20, :20].reshape(N, C_out, 10, 2, 10, 2)
    ref = rc.max(axis=(3, 5))

    np.testing.assert_allclose(np.asarray(out), np.asarray(ref),
                               rtol=2e-2, atol=2e-2)
    print("KERNEL_OK")
</pallas_src>

<mosaic_0001>
module attributes {stable_mosaic.version = 11 : i64} {
  func.func @kernel(%arg0: i32, %arg1: i32, %arg2: memref<1x1x128x144xbf16, #tpu.memory_space<vmem>>, %arg3: memref<144x128xbf16, #tpu.memory_space<vmem>>, %arg4: memref<1x32x128xf32, #tpu.memory_space<vmem>>) attributes {dimension_semantics = [#tpu.dimension_semantics<parallel>, #tpu.dimension_semantics<parallel>], iteration_bounds = array<i64: 2, 4>, scalar_prefetch = 0 : i64, scratch_operands = 0 : i64, tpu.core_type = #tpu.core_type<tc>, window_params = [{transform_indices = @transform_0, window_bounds = array<i64: 1, 1, 128, 144>}, {pipeline_mode = #tpu.pipeline_mode<synchronous>, transform_indices = @transform_1, window_bounds = array<i64: 144, 128>}, {transform_indices = @transform_2, window_bounds = array<i64: 1, 32, 128>}]} {
    %c0 = arith.constant 0 : index
    %c0_0 = arith.constant 0 : index
    %c0_1 = arith.constant 0 : index
    %c0_2 = arith.constant 0 : index
    %0 = vector.load %arg2[%c0, %c0_0, %c0_1, %c0_2] : memref<1x1x128x144xbf16, #tpu.memory_space<vmem>>, vector<1x1x128x144xbf16>
    %1 = vector.shape_cast %0 : vector<1x1x128x144xbf16> to vector<128x144xbf16>
    %c0_3 = arith.constant 0 : index
    %c0_4 = arith.constant 0 : index
    %2 = vector.load %arg3[%c0_3, %c0_4] : memref<144x128xbf16, #tpu.memory_space<vmem>>, vector<144x128xbf16>
    %cst = arith.constant dense<0.000000e+00> : vector<128x128xf32>
    %3 = tpu.matmul %1, %2, %cst {dimension_numbers = #tpu.dot_dimension_numbers<[1], [0], [0], [1], [0, 0, 1, 1], [], []>} : vector<128x144xbf16>, vector<144x128xbf16>, vector<128x128xf32> -> vector<128x128xf32>
    %4 = vector.extract_strided_slice %3 {offsets = [0, 0], sizes = [32, 128], strides = [1, 1]} : vector<128x128xf32> to vector<32x128xf32>
    %5 = vector.extract_strided_slice %3 {offsets = [32, 0], sizes = [32, 128], strides = [1, 1]} : vector<128x128xf32> to vector<32x128xf32>
    %6 = arith.maximumf %4, %5 : vector<32x128xf32>
    %7 = vector.extract_strided_slice %3 {offsets = [64, 0], sizes = [32, 128], strides = [1, 1]} : vector<128x128xf32> to vector<32x128xf32>
    %8 = arith.maximumf %6, %7 : vector<32x128xf32>
    %9 = vector.extract_strided_slice %3 {offsets = [96, 0], sizes = [32, 128], strides = [1, 1]} : vector<128x128xf32> to vector<32x128xf32>
    %10 = arith.maximumf %8, %9 : vector<32x128xf32>
    %c0_5 = arith.constant 0 : index
    %c0_6 = arith.constant 0 : index
    %c0_7 = arith.constant 0 : index
    %11 = vector.load %arg4[%c0_5, %c0_6, %c0_7] : memref<1x32x128xf32, #tpu.memory_space<vmem>>, vector<1x32x128xf32>
    %12 = vector.shape_cast %11 : vector<1x32x128xf32> to vector<32x128xf32>
    %13 = vector.shape_cast %10 : vector<32x128xf32> to vector<1x32x128xf32>
    tpu.vector_store %arg4[%c0_5, %c0_6, %c0_7], %13 {strides = array<i32>} : memref<1x32x128xf32, #tpu.memory_space<vmem>>, vector<1x32x128xf32>,
    return
  }
  func.func @transform_0(%arg0: i32, %arg1: i32) -> (i32, i32, i32, i32) {
    %c0_i32 = arith.constant 0 : i32
    %c0_i32_0 = arith.constant 0 : i32
    %c0_i32_1 = arith.constant 0 : i32
    return %arg0, %arg1, %c0_i32, %c0_i32_0 : i32, i32, i32, i32
  }
  func.func @transform_1(%arg0: i32, %arg1: i32) -> (i32, i32) {
    %c0_i32 = arith.constant 0 : i32
    %c0_i32_0 = arith.constant 0 : i32
    %c0_i32_1 = arith.constant 0 : i32
    return %c0_i32, %c0_i32_0 : i32, i32
  }
  func.func @transform_2(%arg0: i32, %arg1: i32) -> (i32, i32, i32) {
    %c0_i32 = arith.constant 0 : i32
    %c0_i32_0 = arith.constant 0 : i32
    return %arg0, %arg1, %c0_i32 : i32, i32, i32
  }
}

</mosaic_0001>

<bundles_post_ra>
// kernel: conv_block_forward.1
= control target key start
LH: loop header
LB: loop body
LE: loop exit
PB: predicated region body
PF: predicated region fallthrough
CT: control target
= control target key end

     0   :  { %s824_s9 = smov 0   ;;  %s826_s10 = smov 0   ;;  %s959_s0 = inlined_call_operand.vmem [shape: bf16[2,4,128,144], index: 0, kind: input, shape index: {}]   ;;  %s960_s1 = inlined_call_operand.vmem [shape: bf16[144,128], index: 1, kind: input, shape index: {}]   ;;  %s961_s2 = inlined_call_operand.vmem [shape: f32[2,128,128], index: 2, kind: output, shape index: {}]  }
   0x1   :  { %s828_s11 = smov 0   ;;  %s830_s12 = smov 0  }
   0x2   :  { %s832_s13 = smov 0  }
   0x3 LB: > { %s21_s14 = sadd.s32 1, %s799_s11  ;;  %s24_s15 = sadd.s32 1, %s803_s12  ;;  %s807_s13 = sphi %s832_s13, %s12_s13   ;;  %s803_s12 = sphi %s830_s12, %s965_s12   ;;  %s799_s11 = sphi %s828_s11, %s964_s11   ;;  %s795_s10 = sphi %s826_s10, %s963_s10   ;;  %s791_s9 = sphi %s824_s9, %s962_s9  }
   0x4   : > { %p22_p0 = scmp.ge.s32.totalorder %s21_s14, 4  ;;  %p578_p1 = scmp.ge.s32.totalorder %s807_s13, 1 }
   0x5   : > { %p132_p2 = scmp.lt.s32.totalorder %s807_s13, 9 }
   0x6   : > { %s967_s14 = smov (%p22_p0, %s21_s14), 0  ;;  %s969_s15 = smov (!%p22_p0, %s24_s15), %s803_s12 }
   0x7   : > { %p133_p3 = pnand %p578_p1, %p132_p2  ;;  %p26_p4 = scmp.ge.s32.totalorder %s969_s15, 2 }
   0x8   : > { %p162_p5 = scmp.lt.s32.totalorder (!%p133_p3), %s795_s10, 1  ;;  %p164_p6 = scmp.lt.s32.totalorder (!%p133_p3), %s791_s9, 3 }
   0x9   : > { %s971_s15 = smov (%p26_p4, %s969_s15), 0  ;;  %136 = sbr.rel (%p133_p3) target bundleno = 239 (0xef), region = 28 }
   0xa   : > { %s582_s21 = sshll.u32 (!%p133_p3), %s791_s9, 2 }
   0xb   : > { %p174_p7 = scmp.lt.s32.totalorder (!%p133_p3), %s582_s21, 15 }
   0xe   : > { %v718_v0 = vld [vmem:[%s960_s1 + $0x38] sm:$0xff]  ;;  %v719_v1 = vld [vmem:[%s960_s1 + $0x40] sm:$0xff]  ;;  %v717_v2 = vld [vmem:[%s960_s1 + $0x30] sm:$0xff]  ;;  %s973_s10 = smov (!%p162_p5, %s795_s10), 1  ;;  %vm342_vm0 = vcmask 130048   ;;  %s975_s21 = smov (!%p174_p7, %s582_s21), 15 }
   0xf   : > { %367 = vmatpush.bf16.msra.mxu0 %v718_v0  ;;  %720 = vmatpush.bf16.msra.mxu2 %v718_v0  ;;  %s165_s22 = scalar_select %p164_p6, %s791_s9, 3  ;;  %v716_v3 = vld [vmem:[%s960_s1 + $0x28] sm:$0xff]  ;;  %v715_v7 = vld [vmem:[%s960_s1 + $0x20] sm:$0xff]  ;;  %v714_v11 = vld [vmem:[%s960_s1 + $0x18] sm:$0xff] }
  0x10   : > { %423 = vmatpush.bf16.msra.mxu1 %v719_v1  ;;  %728 = vmatpush.bf16.msra.mxu3 %v719_v1  ;;  %s580_s23 = sshll.u32 %s973_s10, 7  ;;  %v713_v12 = vld [vmem:[%s960_s1 + $0x10] sm:$0xff]  ;;  %v712_v15 = vld [vmem:[%s960_s1 + $0x8] sm:$0xff]  ;;  %v711_v19 = vld [vmem:[%s960_s1] sm:$0xff] }
  0x11   : > { %s579_s24 = sshll.u32 %s165_s22, 5  ;;  %s583_s22 = sshll.u32 %s973_s10, 4 }
  0x12   : > { %s168_s27 = sadd.s32 %s580_s23, %s579_s24  ;;  %s177_s23 = sadd.s32 %s583_s22, %s975_s21 }
  0x13   : > { %368 = vmatpush.bf16.msra.mxu0 %v717_v2  ;;  %721 = vmatpush.bf16.msra.mxu2 %v717_v2  ;;  %s581_s28 = sshll.u32 %s168_s27, 2  ;;  %s584_s24 = sshll.u32 %s177_s23, 3 }
  0x14   : > { %s876_s3 = scalar_lea.vmem %s959_s0, %s581_s28  ;;  %s938_s26 = scalar_lea.vmem %s961_s2, %s584_s24 }
  0x15   : > { %v695_v4 = vld [vmem:[%s876_s3 + $0x4] sm:$0xf]  ;;  %v589_v5 = vld [vmem:[%s876_s3 + $0x8] sm:$0xf0]  ;;  %v705_v8 = vld [vmem:[%s876_s3 + $0x54] sm:$0xf] }
  0x16   : > { %v592_v6 = vor.u32 %v695_v4, %v589_v5  ;;  %v629_v9 = vld [vmem:[%s876_s3 + $0x58] sm:$0xf0]  ;;  %v697_v13 = vld [vmem:[%s876_s3 + $0x14] sm:$0xf]  ;;  %v707_v17 = vld [vmem:[%s876_s3 + $0x64] sm:$0xf] }
  0x17   : > { %369 = vmatpush.bf16.msra.mxu0 %v716_v3  ;;  %722 = vmatpush.bf16.msra.mxu2 %v716_v3  ;;  %v632_v10 = vor.u32 %v705_v8, %v629_v9  ;;  %v597_v14 = vld [vmem:[%s876_s3 + $0x18] sm:$0xf0]  ;;  %v637_v18 = vld [vmem:[%s876_s3 + $0x68] sm:$0xf0]  ;;  %v587_v20 = vld [vmem:[%s876_s3] sm:$0xf] }
  0x18   : > { %685 = vmatmul.msk.bf16.vlgmr.msra.gmra.mxu1 %vm342_vm0, %v592_v6  ;;  %v600_v16 = vor.u32 %v697_v13, %v597_v14  ;;  %v696_v21 = vld [vmem:[%s876_s3 + $0x4] sm:$0xf0]  ;;  %v619_v22 = vld [vmem:[%s876_s3 + $0x40] sm:$0xf]  ;;  %v640_v24 = vor.u32 %v707_v17, %v637_v18  ;;  %v699_v27 = vld [vmem:[%s876_s3 + $0x24] sm:$0xf] }
  0x19   : > { %690 = vmatmul.msk.bf16.vlgmr.msra.gmra.mxu3 %vm342_vm0, %v632_v10  ;;  %v704_v23 = vld [vmem:[%s876_s3 + $0x44] sm:$0xf0]  ;;  %v588_v25 = vor.u32 %v696_v21, %v587_v20  ;;  %v605_v28 = vld [vmem:[%s876_s3 + $0x28] sm:$0xf0]  ;;  %v709_v30 = vld [vmem:[%s876_s3 + $0x74] sm:$0xf] }
  0x1a   : > { %v620_v26 = vor.u32 %v704_v23, %v619_v22  ;;  %v608_v29 = vor.u32 %v699_v27, %v605_v28  ;;  %v645_v31 = vld [vmem:[%s876_s3 + $0x78] sm:$0xf0]  ;;  %v595_v32 = vld [vmem:[%s876_s3 + $0x10] sm:$0xf]  ;;  %v698_v33 = vld [vmem:[%s876_s3 + $0x14] sm:$0xf0] }
  0x1b   : > { %370 = vmatpush.bf16.msra.mxu0 %v715_v7  ;;  %723 = vmatpush.bf16.msra.mxu2 %v715_v7  ;;  %v627_v34 = vld [vmem:[%s876_s3 + $0x50] sm:$0xf]  ;;  %v706_v35 = vld [vmem:[%s876_s3 + $0x54] sm:$0xf0]  ;;  %v648_v36 = vor.u32 %v709_v30, %v645_v31  ;;  %v596_v37 = vor.u32 %v698_v33, %v595_v32  ;;  %v701_v39 = vld [vmem:[%s876_s3 + $0x34] sm:$0xf] }
  0x1c   : > { %v628_v38 = vor.u32 %v706_v35, %v627_v34  ;;  %v613_v40 = vld [vmem:[%s876_s3 + $0x38] sm:$0xf0]  ;;  %v603_v42 = vld [vmem:[%s876_s3 + $0x20] sm:$0xf]  ;;  %v700_v43 = vld [vmem:[%s876_s3 + $0x24] sm:$0xf0] }
  0x1d   : > { %v616_v41 = vor.u32 %v701_v39, %v613_v40  ;;  %v635_v44 = vld [vmem:[%s876_s3 + $0x60] sm:$0xf]  ;;  %v708_v45 = vld [vmem:[%s876_s3 + $0x64] sm:$0xf0]  ;;  %v604_v46 = vor.u32 %v700_v43, %v603_v42  ;;  %v703_v48 = vld [vmem:[%s876_s3 + $0x44] sm:$0xf] }
  0x1e   : > { %v636_v47 = vor.u32 %v708_v45, %v635_v44  ;;  %v621_v49 = vld [vmem:[%s876_s3 + $0x48] sm:$0xf0]  ;;  %v611_v51 = vld [vmem:[%s876_s3 + $0x30] sm:$0xf]  ;;  %v702_v52 = vld [vmem:[%s876_s3 + $0x34] sm:$0xf0] }
  0x1f   : > { %371 = vmatpush.bf16.msra.mxu0 %v714_v11  ;;  %724 = vmatpush.bf16.msra.mxu2 %v714_v11  ;;  %v624_v50 = vor.u32 %v703_v48, %v621_v49  ;;  %v643_v53 = vld [vmem:[%s876_s3 + $0x70] sm:$0xf]  ;;  %v710_v54 = vld [vmem:[%s876_s3 + $0x74] sm:$0xf0]  ;;  %v612_v55 = vor.u32 %v702_v52, %v611_v51 }
  0x20   : > { %v644_v56 = vor.u32 %v710_v54, %v643_v53 }
  0x23   : > { %372 = vmatpush.bf16.msra.mxu0 %v713_v12  ;;  %725 = vmatpush.bf16.msra.mxu2 %v713_v12 }
  0x27   : > { %373 = vmatpush.bf16.msra.mxu0 %v712_v15  ;;  %726 = vmatpush.bf16.msra.mxu2 %v712_v15 }
  0x28   : > { %686 = vmatmul.msk.bf16.gmra.mxu1 %vm342_vm0, %v600_v16 }
  0x29   : > { %691 = vmatmul.msk.bf16.gmra.mxu3 %vm342_vm0, %v640_v24 }
  0x2b   : > { %374 = vmatpush.bf16.msra.mxu0 %v711_v19  ;;  %727 = vmatpush.bf16.msra.mxu2 %v711_v19 }
  0x2e   : > { %375 = vmatmul.bf16.vlgmr.msra.gmra.mxu0 %v588_v25  ;;  %395 = vmatmul.bf16.vlgmr.msra.gmra.mxu2 %v620_v26 }
  0x38   : > { %687 = vmatmul.msk.bf16.gmra.mxu1 %vm342_vm0, %v608_v29 }
  0x39   : > { %692 = vmatmul.msk.bf16.gmra.mxu3 %vm342_vm0, %v648_v36 }
  0x3e   : > { %380 = vmatmul.bf16.gmra.mxu0 %v596_v37  ;;  %400 = vmatmul.bf16.gmra.mxu2 %v628_v38 }
  0x48   : > { %688 = vmatmul.msk.bf16.gmra.mxu1 %vm342_vm0, %v616_v41 }
  0x4e   : > { %385 = vmatmul.bf16.gmra.mxu0 %v604_v46  ;;  %405 = vmatmul.bf16.gmra.mxu2 %v636_v47 }
  0x58   : > { %689 = vmatmul.msk.bf16.gmra.mxu1 %vm342_vm0, %v624_v50 }
  0x5e   : > { %390 = vmatmul.bf16.gmra.mxu0 %v612_v55  ;;  %410 = vmatmul.bf16.gmra.mxu2 %v644_v56 }
  0x95   : > { %v425_v57 = vpop.f32.mrf.mxu1 }
  0x9c   : > { %v450_v1 = vpop.f32.mrf.mxu3 }
  0x9d   : > { %v427_v58 = vpop.f32.mrf.mxu1 }
  0xa4   : > { %v452_v6 = vpop.f32.mrf.mxu3 }
  0xa5   : > { %v430_v59 = vpop.f32.mrf.mxu1 }
  0xab   : > { %v376_v60 = vpop.f32.mrf.mxu0 }
  0xac   : > { %v455_v10 = vpop.f32.mrf.mxu3  ;;  %v426_v16 = vadd.f32 %v425_v57, %v376_v60 }
  0xad   : > { %v432_v61 = vpop.f32.mrf.mxu1 }
  0xb1   : > { %v396_v62 = vpop.f32.mrf.mxu2 }
  0xb3   : > { %v378_v63 = vpop.f32.mrf.mxu0 }
  0xb4   : > { %v457_v17 = vpop.f32.mrf.mxu3  ;;  %v428_v29 = vadd.f32 %v427_v58, %v378_v63 }
  0xb5   : > { %v435_v0 = vpop.f32.mrf.mxu1 }
  0xb9   : > { %v398_v2 = vpop.f32.mrf.mxu2 }
  0xbb   : > { %v381_v3 = vpop.f32.mrf.mxu0 }
  0xbc   : > { %v431_v27 = vadd.f32 %v430_v59, %v381_v3  ;;  %v460_v33 = vpop.f32.mrf.mxu3 }
  0xbd   : > { %v437_v4 = vpop.f32.mrf.mxu1 }
  0xc1   : > { %v401_v5 = vpop.f32.mrf.mxu2 }
  0xc2   : > { %v451_v35 = vadd.f32 %v450_v1, %v401_v5 }
  0xc3   : > { %v383_v7 = vpop.f32.mrf.mxu0 }
  0xc4   : > { %v433_v43 = vadd.f32 %v432_v61, %v383_v7  ;;  %v462_v48 = vpop.f32.mrf.mxu3 }
  0xc5   : > { %v440_v8 = vpop.f32.mrf.mxu1 }
  0xc9   : > { %v403_v9 = vpop.f32.mrf.mxu2 }
  0xca   : > { %v453_v47 = vadd.f32 %v452_v6, %v403_v9 }
  0xcb   : > { %v386_v11 = vpop.f32.mrf.mxu0 }
  0xcc   : > { %v436_v14 = vadd.f32 %v435_v0, %v386_v11 }
  0xcd   : > { %v442_v12 = vpop.f32.mrf.mxu1 }
  0xce   : > { %v465_v19 = vmax.f32 %v426_v16, %v436_v14 }
  0xd1   : > { %v406_v13 = vpop.f32.mrf.mxu2 }
  0xd2   : > { %v456_v21 = vadd.f32 %v455_v10, %v406_v13 }
  0xd3   : > { %v388_v15 = vpop.f32.mrf.mxu0 }
  0xd4   : > { %v438_v24 = vadd.f32 %v437_v4, %v388_v15 }
  0xd5   : > { %v445_v18 = vpop.f32.mrf.mxu1 }
  0xd6   : > { %v446_v20 = vadd.f32 %v445_v18, %v396_v62  ;;  %v466_v32 = vmax.f32 %v428_v29, %v438_v24 }
  0xd8   : > { %v469_v22 = vmax.f32 %v465_v19, %v446_v20 }
  0xd9   : > { %v408_v23 = vpop.f32.mrf.mxu2 }
  0xda   : > { %v473_v25 = vmax.f32 %v469_v22, %v456_v21  ;;  %v458_v36 = vadd.f32 %v457_v17, %v408_v23 }
  0xdb   : > { %v391_v26 = vpop.f32.mrf.mxu0 }
  0xdc   : > { %v441_v28 = vadd.f32 %v440_v8, %v391_v26  ;;  %477 = vst [vmem:[%s938_s26] sm:$0xff] %v473_v25 }
  0xdd   : > { %v447_v31 = vpop.f32.mrf.mxu1 }
  0xde   : > { %v467_v30 = vmax.f32 %v431_v27, %v441_v28  ;;  %v448_v34 = vadd.f32 %v447_v31, %v398_v2 }
  0xe0   : > { %v470_v37 = vmax.f32 %v466_v32, %v448_v34  ;;  %v471_v40 = vmax.f32 %v467_v30, %v451_v35 }
  0xe1   : > { %v411_v38 = vpop.f32.mrf.mxu2 }
  0xe2   : > { %v461_v39 = vadd.f32 %v460_v33, %v411_v38  ;;  %v474_v41 = vmax.f32 %v470_v37, %v458_v36 }
  0xe3   : > { %v393_v42 = vpop.f32.mrf.mxu0 }
  0xe4   : > { %v475_v44 = vmax.f32 %v471_v40, %v461_v39  ;;  %v443_v45 = vadd.f32 %v442_v12, %v393_v42  ;;  %478 = vst [vmem:[%s938_s26 + $0x8] sm:$0xff] %v474_v41 }
  0xe6   : > { %479 = vst [vmem:[%s938_s26 + $0x10] sm:$0xff] %v475_v44  ;;  %v468_v46 = vmax.f32 %v433_v43, %v443_v45 }
  0xe8   : > { %v472_v51 = vmax.f32 %v468_v46, %v453_v47 }
  0xe9   : > { %v413_v49 = vpop.f32.mrf.mxu2 }
  0xea   : > { %v463_v50 = vadd.f32 %v462_v48, %v413_v49 }
  0xec   : > { %v476_v52 = vmax.f32 %v472_v51, %v463_v50 }
  0xee   : > { %480 = vst [vmem:[%s938_s26 + $0x18] sm:$0xff] %v476_v52 }
  0xef PF: > { %s12_s13 = sadd.s32 1, %s807_s13   ;;  %s962_s9 = smov %s799_s11 }
  0xf0   : > { %p9_p8 = scmp.ge.s32.totalorder %s12_s13, 10   ;;  %s963_s10 = smov %s803_s12 }
  0xf1   : > { %s964_s11 = smov %s967_s14  ;;  %s965_s12 = smov %s971_s15 }
  0xf2   :  { %11 = sbr.rel (!%p9_p8) target bundleno = 3 (0x3), region = 58 }

</bundles_post_ra>
